<compile_context>
chip_gen: v5e
topology: v5e:2x2
jax: 0.10.0
libtpu: 0.0.40
codegen_flags: <defaults>
</compile_context>

<pallas_src>
import functools

import jax
import jax.numpy as jnp
from jax.experimental import pallas as pl
from jax.experimental.pallas import tpu as pltpu

HIDDEN = 128  # fixed by the module definition


def _round_up(n, m):
    return ((n + m - 1) // m) * m


def _mlp_kernel(x_ref, w1_ref, b1_ref, w2_ref, b2_ref, o_ref):
    # First linear (bf16 inputs, f32 accumulation on the MXU) + bias + ReLU.
    h = jnp.dot(x_ref[...], w1_ref[...], preferred_element_type=jnp.float32)
    h = jnp.maximum(h + b1_ref[...], 0.0)          # b1 (1, HIDDEN) broadcasts
    # Second linear: explicitly cast hidden activations to the weight dtype
    # (bf16 path chosen deliberately), accumulate in f32, then bias + sigmoid.
    y = jnp.dot(h.astype(w2_ref.dtype), w2_ref[...],
                preferred_element_type=jnp.float32)
    y = y + b2_ref[...]                            # b2 (1, out_dim)
    o_ref[...] = jax.nn.sigmoid(y).astype(o_ref.dtype)


@functools.partial(jax.jit, static_argnames=("tm", "compute_dtype"))
def adcls_head_forward(x, w1, b1, w2, b2, *, tm=512, compute_dtype=jnp.bfloat16):
    """x: [..., in_dim] -> [..., out_dim], matching ADCLS_head.forward.

    Weights are stored transposed vs. nn.Linear, i.e. w1:[in,128], w2:[128,out].
    Matmuls run in `compute_dtype` (default bf16) with f32 accumulation.
    """
    in_dim = x.shape[-1]
    out_dim = w2.shape[-1]
    lead_shape = x.shape[:-1]
    out_dtype = x.dtype

    x2d = x.reshape(-1, in_dim).astype(compute_dtype)
    M = x2d.shape[0]

    # Row alignment: 8 sublanes for 4-byte types, 16 for 2-byte (bf16 packing).
    itemsize = jnp.dtype(compute_dtype).itemsize
    row_align = 8 * max(1, 4 // itemsize)

    # Effective row tile: as large as requested but no larger than the
    # (aligned) problem; prefer >= 2 grid steps so both v7x TensorCores work.
    tm_eff = _round_up(min(tm, _round_up(M, row_align)), row_align)
    if _round_up(M, tm_eff) // tm_eff < 2 and tm_eff > row_align:
        tm_eff = min(tm_eff, _round_up(pl.cdiv(M, 2), row_align))
    M_pad = _round_up(M, tm_eff)
    if M_pad != M:
        x2d = jnp.pad(x2d, ((0, M_pad - M), (0, 0)))

    w1c = w1.astype(compute_dtype)
    w2c = w2.astype(compute_dtype)
    b1_2d = b1.reshape(1, HIDDEN).astype(jnp.float32)
    b2_2d = b2.reshape(1, out_dim).astype(jnp.float32)

    # Explicit VMEM budget: double-buffered x/out streams + resident weights.
    out_isz = jnp.dtype(out_dtype).itemsize
    need = (2 * tm_eff * (in_dim * itemsize + out_dim * out_isz)
            + 2 * (in_dim * HIDDEN + HIDDEN * out_dim) * itemsize
            + 2 * (HIDDEN + out_dim) * 4)
    vmem_limit = int(min(64 * 1024 * 1024,
                         max(2 * need + (4 << 20), 32 * 1024 * 1024)))

    grid = (M_pad // tm_eff,)
    out2d = pl.pallas_call(
        _mlp_kernel,
        out_shape=jax.ShapeDtypeStruct((M_pad, out_dim), out_dtype),
        grid_spec=pltpu.PrefetchScalarGridSpec(
            num_scalar_prefetch=0,
            grid=grid,
            in_specs=[
                # Streaming activation tile.
                pl.BlockSpec((tm_eff, in_dim), lambda i: (i, 0)),
                # Weights/biases: constant index maps -> fetched once, stay
                # resident in VMEM for the whole grid (no re-DMA per step).
                pl.BlockSpec((in_dim, HIDDEN), lambda i: (0, 0)),   # W1
                pl.BlockSpec((1, HIDDEN), lambda i: (0, 0)),        # b1
                pl.BlockSpec((HIDDEN, out_dim), lambda i: (0, 0)),  # W2
                pl.BlockSpec((1, out_dim), lambda i: (0, 0)),       # b2
            ],
            out_specs=pl.BlockSpec((tm_eff, out_dim), lambda i: (i, 0)),
        ),
        compiler_params=pltpu.CompilerParams(
            dimension_semantics=("parallel",),
            vmem_limit_bytes=vmem_limit),
    )(x2d, w1c, b1_2d, w2c, b2_2d)

    return out2d[:M].reshape(*lead_shape, out_dim)


def init_params(key, in_dim, out_dim, dtype=jnp.float32):
    """Deterministic init mimicking nn.Linear's uniform(-1/sqrt(fan_in), ...)."""
    k1, k2, k3, k4 = jax.random.split(key, 4)
    bound1 = 1.0 / (in_dim ** 0.5)
    bound2 = 1.0 / (HIDDEN ** 0.5)
    # Stored as [in, out] (transposed vs. PyTorch's [out, in]).
    w1 = jax.random.uniform(k1, (in_dim, HIDDEN), dtype, -bound1, bound1)
    b1 = jax.random.uniform(k2, (HIDDEN,), dtype, -bound1, bound1)
    w2 = jax.random.uniform(k3, (HIDDEN, out_dim), dtype, -bound2, bound2)
    b2 = jax.random.uniform(k4, (out_dim,), dtype, -bound2, bound2)
    return w1, b1, w2, b2


def _reference(x, w1, b1, w2, b2, compute_dtype=jnp.bfloat16):
    """Same-precision reference (bf16 GEMM inputs, f32 accumulation)."""
    xc = x.astype(compute_dtype)
    h = jnp.dot(xc, w1.astype(compute_dtype), preferred_element_type=jnp.float32)
    h = jnp.maximum(h + b1.astype(jnp.float32), 0.0)
    y = jnp.dot(h.astype(compute_dtype), w2.astype(compute_dtype),
                preferred_element_type=jnp.float32)
    y = y + b2.astype(jnp.float32)
    return jax.nn.sigmoid(y).astype(x.dtype)


if __name__ == "__main__":
    in_dim, out_dim = 32, 16
    batch, seq = 3, 7          # flattened M = 21 rows -> exercises the ragged tail

    key = jax.random.PRNGKey(0)
    kx, kp = jax.random.split(key)
    x = jax.random.normal(kx, (batch, seq, in_dim), jnp.float32)
    w1, b1, w2, b2 = init_params(kp, in_dim, out_dim)

    out = adcls_head_forward(x, w1, b1, w2, b2)
    out = jax.block_until_ready(out)

    ref = _reference(x, w1, b1, w2, b2)
    assert out.shape == (batch, seq, out_dim)
    assert jnp.allclose(out, ref, atol=2e-4, rtol=1e-3), "mismatch vs reference"

    print("KERNEL_OK")
</pallas_src>

<mosaic_0001>
module attributes {stable_mosaic.version = 11 : i64} {
  func.func @_mlp_kernel(%arg0: i32, %arg1: memref<16x32xbf16, #tpu.memory_space<vmem>>, %arg2: memref<32x128xbf16, #tpu.memory_space<vmem>>, %arg3: memref<1x128xf32, #tpu.memory_space<vmem>>, %arg4: memref<128x16xbf16, #tpu.memory_space<vmem>>, %arg5: memref<1x16xf32, #tpu.memory_space<vmem>>, %arg6: memref<16x16xf32, #tpu.memory_space<vmem>>) attributes {dimension_semantics = [#tpu.dimension_semantics<parallel>], iteration_bounds = array<i64: 2>, scalar_prefetch = 0 : i64, scratch_operands = 0 : i64, tpu.core_type = #tpu.core_type<tc>, window_params = [{transform_indices = @transform_0, window_bounds = array<i64: 16, 32>}, {pipeline_mode = #tpu.pipeline_mode<synchronous>, transform_indices = @transform_1, window_bounds = array<i64: 32, 128>}, {pipeline_mode = #tpu.pipeline_mode<synchronous>, transform_indices = @transform_2, window_bounds = array<i64: 1, 128>}, {pipeline_mode = #tpu.pipeline_mode<synchronous>, transform_indices = @transform_3, window_bounds = array<i64: 128, 16>}, {pipeline_mode = #tpu.pipeline_mode<synchronous>, transform_indices = @transform_4, window_bounds = array<i64: 1, 16>}, {transform_indices = @transform_5, window_bounds = array<i64: 16, 16>}]} {
    %c0 = arith.constant 0 : index
    %c0_0 = arith.constant 0 : index
    %0 = vector.load %arg1[%c0, %c0_0] : memref<16x32xbf16, #tpu.memory_space<vmem>>, vector<16x32xbf16>
    %c0_1 = arith.constant 0 : index
    %c0_2 = arith.constant 0 : index
    %1 = vector.load %arg2[%c0_1, %c0_2] : memref<32x128xbf16, #tpu.memory_space<vmem>>, vector<32x128xbf16>
    %cst = arith.constant dense<0.000000e+00> : vector<16x128xf32>
    %2 = tpu.matmul %0, %1, %cst {dimension_numbers = #tpu.dot_dimension_numbers<[1], [0], [0], [1], [0, 0, 1, 1], [], []>} : vector<16x32xbf16>, vector<32x128xbf16>, vector<16x128xf32> -> vector<16x128xf32>
    %c0_3 = arith.constant 0 : index
    %c0_4 = arith.constant 0 : index
    %3 = vector.load %arg3[%c0_3, %c0_4] : memref<1x128xf32, #tpu.memory_space<vmem>>, vector<1x128xf32>
    %4 = vector.broadcast %3 : vector<1x128xf32> to vector<16x128xf32>
    %5 = arith.addf %2, %4 : vector<16x128xf32>
    %cst_5 = arith.constant 0.000000e+00 : f32
    %6 = vector.broadcast %cst_5 : f32 to vector<16x128xf32>
    %7 = arith.maximumf %5, %6 : vector<16x128xf32>
    %8 = arith.truncf %7 : vector<16x128xf32> to vector<16x128xbf16>
    %c0_6 = arith.constant 0 : index
    %c0_7 = arith.constant 0 : index
    %9 = vector.load %arg4[%c0_6, %c0_7] : memref<128x16xbf16, #tpu.memory_space<vmem>>, vector<128x16xbf16>
    %cst_8 = arith.constant dense<0.000000e+00> : vector<16x16xf32>
    %10 = tpu.matmul %8, %9, %cst_8 {dimension_numbers = #tpu.dot_dimension_numbers<[1], [0], [0], [1], [0, 0, 1, 1], [], []>} : vector<16x128xbf16>, vector<128x16xbf16>, vector<16x16xf32> -> vector<16x16xf32>
    %c0_9 = arith.constant 0 : index
    %c0_10 = arith.constant 0 : index
    %11 = vector.load %arg5[%c0_9, %c0_10] : memref<1x16xf32, #tpu.memory_space<vmem>>, vector<1x16xf32>
    %12 = vector.broadcast %11 : vector<1x16xf32> to vector<16x16xf32>
    %13 = arith.addf %10, %12 : vector<16x16xf32>
    %14 = arith.negf %13 : vector<16x16xf32>
    %15 = math.exp %14 : vector<16x16xf32>
    %cst_11 = arith.constant 1.000000e+00 : f32
    %16 = vector.broadcast %cst_11 : f32 to vector<16x16xf32>
    %17 = arith.addf %16, %15 : vector<16x16xf32>
    %18 = arith.divf %16, %17 : vector<16x16xf32>
    %c0_12 = arith.constant 0 : index
    %c0_13 = arith.constant 0 : index
    %19 = vector.load %arg6[%c0_12, %c0_13] : memref<16x16xf32, #tpu.memory_space<vmem>>, vector<16x16xf32>
    tpu.vector_store %arg6[%c0_12, %c0_13], %18 {strides = array<i32>} : memref<16x16xf32, #tpu.memory_space<vmem>>, vector<16x16xf32>,
    return
  }
  func.func @transform_0(%arg0: i32) -> (i32, i32) {
    %c0_i32 = arith.constant 0 : i32
    %c0_i32_0 = arith.constant 0 : i32
    return %arg0, %c0_i32 : i32, i32
  }
  func.func @transform_1(%arg0: i32) -> (i32, i32) {
    %c0_i32 = arith.constant 0 : i32
    %c0_i32_0 = arith.constant 0 : i32
    %c0_i32_1 = arith.constant 0 : i32
    return %c0_i32, %c0_i32_0 : i32, i32
  }
  func.func @transform_2(%arg0: i32) -> (i32, i32) {
    %c0_i32 = arith.constant 0 : i32
    %c0_i32_0 = arith.constant 0 : i32
    %c0_i32_1 = arith.constant 0 : i32
    return %c0_i32, %c0_i32_0 : i32, i32
  }
  func.func @transform_3(%arg0: i32) -> (i32, i32) {
    %c0_i32 = arith.constant 0 : i32
    %c0_i32_0 = arith.constant 0 : i32
    %c0_i32_1 = arith.constant 0 : i32
    return %c0_i32, %c0_i32_0 : i32, i32
  }
  func.func @transform_4(%arg0: i32) -> (i32, i32) {
    %c0_i32 = arith.constant 0 : i32
    %c0_i32_0 = arith.constant 0 : i32
    %c0_i32_1 = arith.constant 0 : i32
    return %c0_i32, %c0_i32_0 : i32, i32
  }
  func.func @transform_5(%arg0: i32) -> (i32, i32) {
    %c0_i32 = arith.constant 0 : i32
    %c0_i32_0 = arith.constant 0 : i32
    return %arg0, %c0_i32 : i32, i32
  }
}

</mosaic_0001>

<bundles_post_ra>
// kernel: adcls_head_forward.1
= control target key start
LH: loop header
LB: loop body
LE: loop exit
PB: predicated region body
PF: predicated region fallthrough
CT: control target
= control target key end

     0   :  { %s581_s18 = smov 0   ;;  %s640_s0 = inlined_call_operand.vmem [shape: bf16[32,32], index: 0, kind: input, shape index: {}]   ;;  %s641_s1 = inlined_call_operand.vmem [shape: bf16[32,128], index: 1, kind: input, shape index: {}]   ;;  %s642_s2 = inlined_call_operand.vmem [shape: f32[1,128], index: 2, kind: input, shape index: {}]   ;;  %s643_s3 = inlined_call_operand.vmem [shape: bf16[128,16], index: 3, kind: input, shape index: {}]   ;;  %s644_s4 = inlined_call_operand.vmem [shape: f32[1,16], index: 4, kind: input, shape index: {}]   ;;  %s645_s5 = inlined_call_operand.vmem [shape: f32[32,16], index: 5, kind: output, shape index: {}]  }
   0x1 LB: > { %s456_s19 = sadd.s32 4294967295, %s549_s18   ;;  %p460_p0 = scmp.ge.s32.totalorder %s549_s18, 1  ;;  %s549_s18 = sphi %s581_s18, %s15_s18  }
   0x2   : > { %p188_p1 = scmp.lt.s32.totalorder %s549_s18, 3 }
   0x4   : > { %p189_p2 = pnand %p460_p0, %p188_p1 }
   0x5   : > { %s461_s22 = sshll.u32 (!%p189_p2), %s456_s19, 1 }
   0x6   : > { %192 = sbr.rel (%p189_p2) target bundleno = 324 (0x144), region = 40  ;;  %p217_p3 = scmp.lt.s32.totalorder (!%p189_p2), %s461_s22, 3 }
   0xb   : > { %v516_v0 = vld [vmem:[%s641_s1 + $0x8] sm:$0xff]  ;;  %v524_v1 = vld [vmem:[%s643_s3 + $0x38] sm:$0xff]  ;;  %v515_v2 = vld [vmem:[%s641_s1] sm:$0xff]  ;;  %s647_s22 = smov (!%p217_p3, %s461_s22), 3  ;;  %vm256_vm0 = vcmask 261120   ;;  %vm397_vm4 = vcmask 130048  }
   0xc   : > { %266 = vmatpush.bf16.msra.mxu0 %v516_v0  ;;  %345 = vmatpush.bf16.msra.mxu1 %v524_v1  ;;  %v523_v3 = vld [vmem:[%s643_s3 + $0x30] sm:$0xff]  ;;  %s462_s29 = sshll.u32 %s647_s22, 2  ;;  %v522_v4 = vld [vmem:[%s643_s3 + $0x28] sm:$0xff]  ;;  %v521_v6 = vld [vmem:[%s643_s3 + $0x20] sm:$0xff]  ;;  %s464_s26 = sshll.u32 %s647_s22, 3 }
   0xd   : > { %s220_s7 = scalar_lea.vmem %s640_s0, %s462_s29  ;;  %v520_v7 = vld [vmem:[%s643_s3 + $0x18] sm:$0xff]  ;;  %v519_v8 = vld [vmem:[%s643_s3 + $0x10] sm:$0xff]  ;;  %v518_v9 = vld [vmem:[%s643_s3 + $0x8] sm:$0xff]  ;;  %s226_s29 = scalar_lea.vmem %s645_s5, %s464_s26 }
   0xe   : > { %v514_v5 = vld [vmem:[%s220_s7] sm:$0xff] }
   0xf   : > { %v517_v10 = vld [vmem:[%s643_s3] sm:$0xff] }
  0x10   : > { %267 = vmatpush.bf16.msra.mxu0 %v515_v2  ;;  %346 = vmatpush.bf16.msra.mxu1 %v523_v3  ;;  %v533_v12 = vld [vmem:[%s642_s2] ss:$0 sm:$0xff] }
  0x11   : > { %v534_v19 = vld [vmem:[%s644_s4] ss:$0 sm:$0xff] }
  0x13   : > { %477 = vmatmul.msk.bf16.vlgmr.msra.gmra.mxu0 %vm256_vm0, %v514_v5 }
  0x14   : > { %347 = vmatpush.bf16.msra.mxu1 %v522_v4 }
  0x18   : > { %348 = vmatpush.bf16.msra.mxu1 %v521_v6 }
  0x1c   : > { %349 = vmatpush.bf16.msra.mxu1 %v520_v7 }
  0x20   : > { %350 = vmatpush.bf16.msra.mxu1 %v519_v8 }
  0x24   : > { %351 = vmatpush.bf16.msra.mxu1 %v518_v9 }
  0x28   : > { %352 = vmatpush.bf16.msra.mxu1 %v517_v10 }
  0x90   : > { %v269_v11 = vpop.f32.mrf.mxu0 }
  0x91   : > { %v270_v13 = vadd.f32 %v533_v12, %v269_v11 }
  0x93   : > { %v274_v16 = vmax.f32 %v270_v13, 0.0 }
  0x98   : > { %v271_v14 = vpop.f32.mrf.mxu0 }
  0x99   : > { %v272_v15 = vadd.f32 %v533_v12, %v271_v14 }
  0x9b   : > { %v275_v17 = vmax.f32 %v272_v15, 0.0 }
  0x9d   : > { %v276_v18 = vpack.c.bf16 %v275_v17, %v274_v16 }
  0x9f   : > { %353 = vmatmul.bf16.vlgmr.msra.gmra.mxu1 %v276_v18 }
 0x11c   : > { %v354_v20 = vpop.f32.mrf.mxu1 }
 0x11d   : > { %v355_v21 = vadd.f32 %v534_v19, %v354_v20 }
 0x11f   : > { %v510_v22 = vmul.f32 -1.442695, %v355_v21 }
 0x121   : > { %535 = vpow2.f32 %v510_v22 }
 0x124   : > { %v356_v23 = vpop.f32.mrf.mxu1 }
 0x125   : > { %v357_v24 = vadd.f32 %v534_v19, %v356_v23 }
 0x127   : > { %v536_v25 = vpop.eup %535  ;;  %v511_v26 = vmul.f32 -1.442695, %v357_v24 }
 0x128   : > { %v365_v27 = vadd.f32 1.0, %v536_v25 }
 0x129   : > { %537 = vpow2.f32 %v511_v26 }
 0x12a   : > { %539 = vrcp.f32 %v365_v27  ;;  %v378_v33 = vand.u32 2147483648, %v365_v27  ;;  %v376_v35 = vand.u32 2147483647, %v365_v27  ;;  %vm372_vm2 = vweird.f32 %v365_v27 }
 0x12c   : > { %v379_v38 = vor.u32 1.1754944e-38, %v378_v33  ;;  %vm377_vm5 = vcmp.eq.f32.partialorder %v376_v35, 8.507059e+37 }
 0x12f   : > { %v538_v28 = vpop.eup %537 }
 0x130   : > { %v540_v29 = vpop.eup %539  ;;  %v366_v30 = vadd.f32 1.0, %v538_v28 }
 0x131   : > { %v368_v31 = vmul.f32 %v540_v29, %v365_v27  ;;  %vm373_vm1 = vweird.f32 %v540_v29 }
 0x132   : > { %541 = vrcp.f32 %v366_v30  ;;  %vm374_vm3 = vmor %vm372_vm2, %vm373_vm1  ;;  %v393_v43 = vand.u32 2147483648, %v366_v30  ;;  %v391_v45 = vand.u32 2147483647, %v366_v30  ;;  %vm387_vm7 = vweird.f32 %v366_v30 }
 0x133   : > { %v369_v32 = vsub.f32 1.0, %v368_v31 }
 0x134   : > { %v394_v47 = vor.u32 1.1754944e-38, %v393_v43  ;;  %vm392_vm9 = vcmp.eq.f32.partialorder %v391_v45, 8.507059e+37 }
 0x135   : > { %v370_v34 = vmul.f32 %v540_v29, %v369_v32 }
 0x137   : > { %v371_v36 = vadd.f32 %v540_v29, %v370_v34 }
 0x138   : > { %v542_v37 = vpop.eup %541 }
 0x139   : > { %v375_v39 = vsel %vm374_vm3, %v540_v29, %v371_v36  ;;  %v383_v40 = vmul.f32 %v542_v37, %v366_v30  ;;  %vm388_vm6 = vweird.f32 %v542_v37 }
 0x13a   : > { %v380_v41 = vsel %vm377_vm5, %v379_v38, %v375_v39  ;;  %vm389_vm8 = vmor %vm387_vm7, %vm388_vm6 }
 0x13b   : > { %398 = vst.msk [vmem:[%s226_s29] sm:$0xff] %vm397_vm4, %v380_v41  ;;  %v384_v42 = vsub.f32 1.0, %v383_v40 }
 0x13d   : > { %v385_v44 = vmul.f32 %v542_v37, %v384_v42 }
 0x13f   : > { %v386_v46 = vadd.f32 %v542_v37, %v385_v44 }
 0x141   : > { %v390_v48 = vsel %vm389_vm8, %v542_v37, %v386_v46 }
 0x142   : > { %v395_v49 = vsel %vm392_vm9, %v394_v47, %v390_v48 }
 0x143   : > { %399 = vst.msk [vmem:[%s226_s29 + $0x8] sm:$0xff] %vm397_vm4, %v395_v49 }
 0x144 PF: > { %s15_s18 = sadd.s32 1, %s549_s18  }
 0x145   : > { %p12_p4 = scmp.ge.s32.totalorder %s15_s18, 4  }
 0x147   :  { %14 = sbr.rel (!%p12_p4) target bundleno = 1 (0x1), region = 70 }

</bundles_post_ra>
